<compile_context>
chip_gen: v5e
topology: v5e:2x2
jax: 0.10.0
libtpu: 0.0.40
codegen_flags: <defaults>
</compile_context>

<pallas_src>
import jax
import jax.numpy as jnp
from jax import lax
from jax.experimental import pallas as pl
from jax.experimental.pallas import tpu as pltpu


def _softmax_last(x):
    m = jnp.max(x, axis=-1, keepdims=True)
    e = jnp.exp(x - m)
    # strictly-positive denominator -> approx reciprocal on the EUP is safe & free
    return e * pl.reciprocal(jnp.sum(e, axis=-1, keepdims=True), approx=True)


# contract last dim of lhs with last dim of rhs (avoids materializing k^T)
_CDN = (((1,), (1,)), ((), ()))


# ---------------------------------------------------------------------------
# Single fused kernel: grid=(B,), one batch element per grid step.
# ---------------------------------------------------------------------------
def _fused_kernel(len_ref,
                  enc_ref, pos_ref, pol_ref, asp_ref,
                  w_au_ref, b_au_ref,
                  p_wk_ref, p_bk_ref, p_wq_ref, p_bq_ref, p_wp_ref, p_bp_ref,
                  v_hp_enc_ref, v_hp_pol_ref,
                  v_hap_enc_ref, v_hap_pos_ref, v_hap_asp_ref,
                  w1a_ref, w1b_ref, b1_ref, w2_ref, b2_ref,
                  o_ref):
    b = pl.program_id(0)
    enc = enc_ref[0]                                                 # (T, H)
    T = enc.shape[0]

    # squeeze_embedding: zero padded tail (truncation to max_x done by wrapper slice)
    valid = (lax.broadcasted_iota(jnp.int32, (T, 1), 0) < len_ref[b]).astype(jnp.float32)
    pos = pos_ref[0] * valid                                         # (T, P)
    pol = pol_ref[0] * valid                                         # (T, 50)

    # aspect_u = Linear(aspect)
    aspect_u = jnp.dot(asp_ref[0], w_au_ref[...],
                       preferred_element_type=jnp.float32) + b_au_ref[...]       # (1, W)

    # attention_p : 1-head dot-product self attention over polar
    kx = jnp.dot(pol, p_wk_ref[...], preferred_element_type=jnp.float32) + p_bk_ref[...]
    qx = jnp.dot(pol, p_wq_ref[...], preferred_element_type=jnp.float32) + p_bq_ref[...]
    s = _softmax_last(lax.dot_general(qx, kx, _CDN, preferred_element_type=jnp.float32))  # (T, T)
    polar_att = jnp.dot(jnp.dot(s, kx, preferred_element_type=jnp.float32),
                        p_wp_ref[...], preferred_element_type=jnp.float32) + p_bp_ref[...]  # (T, 50)

    # attention_hp (folded query) -> sp.  sp is never used downstream in the reference
    # forward(), so this (and attention_p above) is dead code that Mosaic DCEs away.
    hp_logit = (lax.dot_general(v_hp_enc_ref[...], enc, _CDN, preferred_element_type=jnp.float32)
                + lax.dot_general(v_hp_pol_ref[...], polar_att, _CDN,
                                  preferred_element_type=jnp.float32))            # (1, T)
    sp = jnp.dot(_softmax_last(hp_logit), enc, preferred_element_type=jnp.float32)  # (1, H)
    del sp  # unused, mirrors the reference forward

    # attention_hap (folded query; contraction split per concat source enc|position|aspect_u)
    # The omitted qw @ bk^T term is constant across T and cancels exactly in the softmax.
    asp_term = lax.dot_general(aspect_u, v_hap_asp_ref[...], _CDN,
                               preferred_element_type=jnp.float32)                # (1, 1)
    hap_logit = (lax.dot_general(v_hap_enc_ref[...], enc, _CDN, preferred_element_type=jnp.float32)
                 + lax.dot_general(v_hap_pos_ref[...], pos, _CDN, preferred_element_type=jnp.float32)
                 + asp_term)                                                      # (1, T)
    sa = jnp.dot(_softmax_last(hap_logit), enc, preferred_element_type=jnp.float32)  # (1, H)

    # s_max over seq + dense head: Linear(2H->H) [split], Dropout(eval=identity), Tanh, Linear(H->NP)
    s_max = jnp.max(enc, axis=0, keepdims=True)                                   # (1, H)
    h = (jnp.dot(s_max, w1a_ref[...], preferred_element_type=jnp.float32)
         + jnp.dot(sa, w1b_ref[...], preferred_element_type=jnp.float32)
         + b1_ref[...])
    h = jnp.tanh(h)
    o_ref[0] = jnp.dot(h, w2_ref[...], preferred_element_type=jnp.float32) + b2_ref[...]


# ---------------------------------------------------------------------------
# Parameter init (deterministic, synthetic)
# ---------------------------------------------------------------------------
def init_params(key, hidden_dim, word_embed_dim, position_dim, num_polar, polar_dim=50):
    E_p = polar_dim
    E_hp = polar_dim + hidden_dim
    E_hap = word_embed_dim + hidden_dim + position_dim
    keys = iter(jax.random.split(key, 32))

    def lin(n_in, n_out):
        return (0.1 * jax.random.normal(next(keys), (n_in, n_out), jnp.float32),
                0.1 * jax.random.normal(next(keys), (1, n_out), jnp.float32))

    p = {}
    p['aspect_u_w'], p['aspect_u_b'] = lin(word_embed_dim, word_embed_dim)
    # attention_p : Attention(50), dot_product, n_head=1
    p['p_wk'], p['p_bk'] = lin(E_p, E_p)
    p['p_wq'], p['p_bq'] = lin(E_p, E_p)
    p['p_wp'], p['p_bp'] = lin(E_p, E_p)
    # attention_hp : NoQueryAttention(50 + H, bi_linear)
    p['hp_wk'], p['hp_bk'] = lin(E_hp, E_hp)
    p['hp_wq'], p['hp_bq'] = lin(E_hp, E_hp)
    p['hp_wb'] = 0.1 * jax.random.normal(next(keys), (E_hp, E_hp), jnp.float32)
    p['hp_q'] = 0.1 * jax.random.normal(next(keys), (1, E_hp), jnp.float32)
    # attention_hap : NoQueryAttention(W + H + P, bi_linear)
    p['hap_wk'], p['hap_bk'] = lin(E_hap, E_hap)
    p['hap_wq'], p['hap_bq'] = lin(E_hap, E_hap)
    p['hap_wb'] = 0.1 * jax.random.normal(next(keys), (E_hap, E_hap), jnp.float32)
    p['hap_q'] = 0.1 * jax.random.normal(next(keys), (1, E_hap), jnp.float32)
    # dense head
    p['d1_w'], p['d1_b'] = lin(2 * hidden_dim, hidden_dim)
    p['d2_w'], p['d2_b'] = lin(hidden_dim, num_polar)
    return p
    # TODO(synk): attention_s (3-head scaled-dot) and self.lp (ReLU) exist in __init__
    # but are never used in forward(); they are intentionally not materialized.


# ---------------------------------------------------------------------------
# Forward: host-side query folding + one fused pallas_call
# ---------------------------------------------------------------------------
def primary_position_forward(params, encoder_out, position, polar, aspect, len_x, max_x):
    B, T, H = encoder_out.shape            # T == max_x
    P = position.shape[-1]
    W = aspect.shape[-1]
    E_pol = polar.shape[-1]
    NP = params['d2_w'].shape[-1]

    # squeeze_embedding truncation to max_x (padded-tail zeroing happens in-kernel)
    position = position[:, :max_x]
    polar = polar[:, :max_x]

    # Fold batch-invariant NoQueryAttention query math once:
    #   score = softmax(((q@Wq+bq)@Wb) @ (k@Wk+bk)^T)  ==  softmax(v @ k^T + const)
    # with v = ((q@Wq+bq)@Wb) @ Wk^T; the const (.. @ bk^T) cancels in the softmax.
    def fold(prefix):
        qw = (params[prefix + '_q'] @ params[prefix + '_wq'] + params[prefix + '_bq']) \
             @ params[prefix + '_wb']
        return qw @ params[prefix + '_wk'].T

    v_hp = fold('hp')                      # (1, H + 50)   order: [enc | polar_att]
    v_hap = fold('hap')                    # (1, H + P + W) order: [enc | position | aspect_u]
    v_hp_enc, v_hp_pol = v_hp[:, :H], v_hp[:, H:]
    v_hap_enc = v_hap[:, :H]
    v_hap_pos = v_hap[:, H:H + P]
    v_hap_asp = v_hap[:, H + P:]

    # split Linear(2H->H) weight: cat(s_max, sa) @ W1 == s_max @ W1[:H] + sa @ W1[H:]
    w1a, w1b = params['d1_w'][:H], params['d1_w'][H:]

    weights = (params['aspect_u_w'], params['aspect_u_b'],
               params['p_wk'], params['p_bk'], params['p_wq'], params['p_bq'],
               params['p_wp'], params['p_bp'],
               v_hp_enc, v_hp_pol,
               v_hap_enc, v_hap_pos, v_hap_asp,
               w1a, w1b, params['d1_b'], params['d2_w'], params['d2_b'])

    def wspec(a):
        nd = a.ndim
        return pl.BlockSpec(tuple(a.shape), lambda b, L, nd=nd: (0,) * nd)

    grid_spec = pltpu.PrefetchScalarGridSpec(
        num_scalar_prefetch=1,             # len_x -> SMEM
        grid=(B,),
        in_specs=[
            pl.BlockSpec((1, T, H), lambda b, L: (b, 0, 0)),       # encoder_out
            pl.BlockSpec((1, T, P), lambda b, L: (b, 0, 0)),       # position (truncated)
            pl.BlockSpec((1, T, E_pol), lambda b, L: (b, 0, 0)),   # polar (truncated)
            pl.BlockSpec((1, 1, W), lambda b, L: (b, 0, 0)),       # aspect
        ] + [wspec(w) for w in weights],
        out_specs=pl.BlockSpec((1, 1, NP), lambda b, L: (b, 0, 0)),
    )

    out = pl.pallas_call(
        _fused_kernel,
        out_shape=jax.ShapeDtypeStruct((B, 1, NP), jnp.float32),
        grid_spec=grid_spec,
        compiler_params=pltpu.CompilerParams(dimension_semantics=("parallel",)),
    )(len_x.astype(jnp.int32), encoder_out, position, polar, aspect, *weights)

    return out[:, 0, :]                    # (B, num_polar)


if __name__ == "__main__":
    B, T_pad = 2, 10
    hidden_dim, word_embed_dim, position_dim, num_polar = 32, 16, 8, 3
    polar_dim = 50

    key = jax.random.PRNGKey(0)
    k_p, k_enc, k_pos, k_pol, k_asp = jax.random.split(key, 5)

    len_x = jnp.array([8, 5], dtype=jnp.int32)
    max_x = int(jnp.max(len_x))            # static python int (torch len_x.max())

    encoder_out = jax.random.normal(k_enc, (B, max_x, hidden_dim), jnp.float32)
    position = jax.random.normal(k_pos, (B, T_pad, position_dim), jnp.float32)
    polar = jax.random.normal(k_pol, (B, T_pad, polar_dim), jnp.float32)
    aspect = jax.random.normal(k_asp, (B, 1, word_embed_dim), jnp.float32)

    params = init_params(k_p, hidden_dim, word_embed_dim, position_dim, num_polar, polar_dim)

    out = primary_position_forward(params, encoder_out, position, polar, aspect, len_x, max_x)
    out = jax.block_until_ready(out)
    assert out.shape == (B, num_polar) and out.dtype == jnp.float32
    print("KERNEL_OK")
</pallas_src>

<mosaic_0001>
module attributes {stable_mosaic.version = 11 : i64} {
  func.func @_fused_kernel(%arg0: i32, %arg1: memref<2xi32, #tpu.memory_space<smem>>, %arg2: memref<1x8x32xf32, #tpu.memory_space<vmem>>, %arg3: memref<1x8x8xf32, #tpu.memory_space<vmem>>, %arg4: memref<1x8x50xf32, #tpu.memory_space<vmem>>, %arg5: memref<1x1x16xf32, #tpu.memory_space<vmem>>, %arg6: memref<16x16xf32, #tpu.memory_space<vmem>>, %arg7: memref<1x16xf32, #tpu.memory_space<vmem>>, %arg8: memref<50x50xf32, #tpu.memory_space<vmem>>, %arg9: memref<1x50xf32, #tpu.memory_space<vmem>>, %arg10: memref<50x50xf32, #tpu.memory_space<vmem>>, %arg11: memref<1x50xf32, #tpu.memory_space<vmem>>, %arg12: memref<50x50xf32, #tpu.memory_space<vmem>>, %arg13: memref<1x50xf32, #tpu.memory_space<vmem>>, %arg14: memref<1x32xf32, #tpu.memory_space<vmem>>, %arg15: memref<1x50xf32, #tpu.memory_space<vmem>>, %arg16: memref<1x32xf32, #tpu.memory_space<vmem>>, %arg17: memref<1x8xf32, #tpu.memory_space<vmem>>, %arg18: memref<1x16xf32, #tpu.memory_space<vmem>>, %arg19: memref<32x32xf32, #tpu.memory_space<vmem>>, %arg20: memref<32x32xf32, #tpu.memory_space<vmem>>, %arg21: memref<1x32xf32, #tpu.memory_space<vmem>>, %arg22: memref<32x3xf32, #tpu.memory_space<vmem>>, %arg23: memref<1x3xf32, #tpu.memory_space<vmem>>, %arg24: memref<1x1x3xf32, #tpu.memory_space<vmem>>) attributes {dimension_semantics = [#tpu.dimension_semantics<parallel>], iteration_bounds = array<i64: 2>, scalar_prefetch = 1 : i64, scratch_operands = 0 : i64, tpu.core_type = #tpu.core_type<tc>, window_params = [{transform_indices = @transform_0, window_bounds = array<i64: 1, 8, 32>}, {transform_indices = @transform_1, window_bounds = array<i64: 1, 8, 8>}, {transform_indices = @transform_2, window_bounds = array<i64: 1, 8, 50>}, {transform_indices = @transform_3, window_bounds = array<i64: 1, 1, 16>}, {pipeline_mode = #tpu.pipeline_mode<synchronous>, transform_indices = @transform_4, window_bounds = array<i64: 16, 16>}, {pipeline_mode = #tpu.pipeline_mode<synchronous>, transform_indices = @transform_5, window_bounds = array<i64: 1, 16>}, {pipeline_mode = #tpu.pipeline_mode<synchronous>, transform_indices = @transform_6, window_bounds = array<i64: 50, 50>}, {pipeline_mode = #tpu.pipeline_mode<synchronous>, transform_indices = @transform_7, window_bounds = array<i64: 1, 50>}, {pipeline_mode = #tpu.pipeline_mode<synchronous>, transform_indices = @transform_8, window_bounds = array<i64: 50, 50>}, {pipeline_mode = #tpu.pipeline_mode<synchronous>, transform_indices = @transform_9, window_bounds = array<i64: 1, 50>}, {pipeline_mode = #tpu.pipeline_mode<synchronous>, transform_indices = @transform_10, window_bounds = array<i64: 50, 50>}, {pipeline_mode = #tpu.pipeline_mode<synchronous>, transform_indices = @transform_11, window_bounds = array<i64: 1, 50>}, {pipeline_mode = #tpu.pipeline_mode<synchronous>, transform_indices = @transform_12, window_bounds = array<i64: 1, 32>}, {pipeline_mode = #tpu.pipeline_mode<synchronous>, transform_indices = @transform_13, window_bounds = array<i64: 1, 50>}, {pipeline_mode = #tpu.pipeline_mode<synchronous>, transform_indices = @transform_14, window_bounds = array<i64: 1, 32>}, {pipeline_mode = #tpu.pipeline_mode<synchronous>, transform_indices = @transform_15, window_bounds = array<i64: 1, 8>}, {pipeline_mode = #tpu.pipeline_mode<synchronous>, transform_indices = @transform_16, window_bounds = array<i64: 1, 16>}, {pipeline_mode = #tpu.pipeline_mode<synchronous>, transform_indices = @transform_17, window_bounds = array<i64: 32, 32>}, {pipeline_mode = #tpu.pipeline_mode<synchronous>, transform_indices = @transform_18, window_bounds = array<i64: 32, 32>}, {pipeline_mode = #tpu.pipeline_mode<synchronous>, transform_indices = @transform_19, window_bounds = array<i64: 1, 32>}, {pipeline_mode = #tpu.pipeline_mode<synchronous>, transform_indices = @transform_20, window_bounds = array<i64: 32, 3>}, {pipeline_mode = #tpu.pipeline_mode<synchronous>, transform_indices = @transform_21, window_bounds = array<i64: 1, 3>}, {transform_indices = @transform_22, window_bounds = array<i64: 1, 1, 3>}]} {
    %c0 = arith.constant 0 : index
    %c0_0 = arith.constant 0 : index
    %c0_1 = arith.constant 0 : index
    %0 = vector.load %arg2[%c0, %c0_0, %c0_1] : memref<1x8x32xf32, #tpu.memory_space<vmem>>, vector<1x8x32xf32>
    %1 = vector.shape_cast %0 : vector<1x8x32xf32> to vector<8x32xf32>
    %2 = tpu.iota {dimensions = array<i32: 0>} : vector<8x1xi32>
    %3 = arith.index_cast %arg0 : i32 to index
    %4 = memref.load %arg1[%3] : memref<2xi32, #tpu.memory_space<smem>>
    %5 = vector.broadcast %4 : i32 to vector<8x1xi32>
    %6 = arith.cmpi slt, %2, %5 : vector<8x1xi32>
    %7 = arith.extui %6 : vector<8x1xi1> to vector<8x1xi32>
    %8 = arith.sitofp %7 : vector<8x1xi32> to vector<8x1xf32>
    %c0_2 = arith.constant 0 : index
    %c0_3 = arith.constant 0 : index
    %c0_4 = arith.constant 0 : index
    %9 = vector.load %arg3[%c0_2, %c0_3, %c0_4] : memref<1x8x8xf32, #tpu.memory_space<vmem>>, vector<1x8x8xf32>
    %10 = vector.shape_cast %9 : vector<1x8x8xf32> to vector<8x8xf32>
    %11 = vector.broadcast %8 : vector<8x1xf32> to vector<8x8xf32>
    %12 = arith.mulf %10, %11 : vector<8x8xf32>
    %c0_5 = arith.constant 0 : index
    %c0_6 = arith.constant 0 : index
    %c0_7 = arith.constant 0 : index
    %13 = vector.load %arg5[%c0_5, %c0_6, %c0_7] : memref<1x1x16xf32, #tpu.memory_space<vmem>>, vector<1x1x16xf32>
    %14 = vector.shape_cast %13 : vector<1x1x16xf32> to vector<1x16xf32>
    %c0_8 = arith.constant 0 : index
    %c0_9 = arith.constant 0 : index
    %15 = vector.load %arg6[%c0_8, %c0_9] : memref<16x16xf32, #tpu.memory_space<vmem>>, vector<16x16xf32>
    %cst = arith.constant dense<0.000000e+00> : vector<1x16xf32>
    %16 = tpu.matmul %14, %15, %cst {dimension_numbers = #tpu.dot_dimension_numbers<[1], [0], [0], [1], [0, 0, 1, 1], [], []>} : vector<1x16xf32>, vector<16x16xf32>, vector<1x16xf32> -> vector<1x16xf32>
    %c0_10 = arith.constant 0 : index
    %c0_11 = arith.constant 0 : index
    %17 = vector.load %arg7[%c0_10, %c0_11] : memref<1x16xf32, #tpu.memory_space<vmem>>, vector<1x16xf32>
    %18 = arith.addf %16, %17 : vector<1x16xf32>
    %c0_12 = arith.constant 0 : index
    %c0_13 = arith.constant 0 : index
    %19 = vector.load %arg18[%c0_12, %c0_13] : memref<1x16xf32, #tpu.memory_space<vmem>>, vector<1x16xf32>
    %cst_14 = arith.constant dense<0.000000e+00> : vector<1x1xf32>
    %20 = tpu.matmul %18, %19, %cst_14 {dimension_numbers = #tpu.dot_dimension_numbers<[1], [1], [0], [0], [0, 0, 1, 0], [], []>} : vector<1x16xf32>, vector<1x16xf32>, vector<1x1xf32> -> vector<1x1xf32>
    %c0_15 = arith.constant 0 : index
    %c0_16 = arith.constant 0 : index
    %21 = vector.load %arg16[%c0_15, %c0_16] : memref<1x32xf32, #tpu.memory_space<vmem>>, vector<1x32xf32>
    %cst_17 = arith.constant dense<0.000000e+00> : vector<1x8xf32>
    %22 = tpu.matmul %21, %1, %cst_17 {dimension_numbers = #tpu.dot_dimension_numbers<[1], [1], [0], [0], [0, 0, 1, 0], [], []>} : vector<1x32xf32>, vector<8x32xf32>, vector<1x8xf32> -> vector<1x8xf32>
    %c0_18 = arith.constant 0 : index
    %c0_19 = arith.constant 0 : index
    %23 = vector.load %arg17[%c0_18, %c0_19] : memref<1x8xf32, #tpu.memory_space<vmem>>, vector<1x8xf32>
    %cst_20 = arith.constant dense<0.000000e+00> : vector<1x8xf32>
    %24 = tpu.matmul %23, %12, %cst_20 {dimension_numbers = #tpu.dot_dimension_numbers<[1], [1], [0], [0], [0, 0, 1, 0], [], []>} : vector<1x8xf32>, vector<8x8xf32>, vector<1x8xf32> -> vector<1x8xf32>
    %25 = arith.addf %22, %24 : vector<1x8xf32>
    %26 = vector.broadcast %20 : vector<1x1xf32> to vector<1x8xf32>
    %27 = arith.addf %25, %26 : vector<1x8xf32>
    %cst_21 = arith.constant dense<0xFF800000> : vector<1xf32>
    %28 = vector.multi_reduction <maximumf>, %27, %cst_21 [1] : vector<1x8xf32> to vector<1xf32>
    %29 = vector.shape_cast %28 : vector<1xf32> to vector<1x1xf32>
    %30 = vector.broadcast %29 : vector<1x1xf32> to vector<1x8xf32>
    %31 = arith.subf %27, %30 : vector<1x8xf32>
    %32 = math.exp %31 : vector<1x8xf32>
    %cst_22 = arith.constant dense<0.000000e+00> : vector<1xf32>
    %33 = vector.multi_reduction <add>, %32, %cst_22 [1] : vector<1x8xf32> to vector<1xf32>
    %34 = vector.shape_cast %33 : vector<1xf32> to vector<1x1xf32>
    %35 = tpu.reciprocal %34 {approx = true} : vector<1x1xf32> -> vector<1x1xf32>
    %36 = vector.broadcast %35 : vector<1x1xf32> to vector<1x8xf32>
    %37 = arith.mulf %32, %36 : vector<1x8xf32>
    %cst_23 = arith.constant dense<0.000000e+00> : vector<1x32xf32>
    %38 = tpu.matmul %37, %1, %cst_23 {dimension_numbers = #tpu.dot_dimension_numbers<[1], [0], [0], [1], [0, 0, 1, 1], [], []>} : vector<1x8xf32>, vector<8x32xf32>, vector<1x32xf32> -> vector<1x32xf32>
    %cst_24 = arith.constant dense<0xFF800000> : vector<32xf32>
    %39 = vector.multi_reduction <maximumf>, %1, %cst_24 [0] : vector<8x32xf32> to vector<32xf32>
    %40 = vector.shape_cast %39 : vector<32xf32> to vector<1x32xf32>
    %c0_25 = arith.constant 0 : index
    %c0_26 = arith.constant 0 : index
    %41 = vector.load %arg19[%c0_25, %c0_26] : memref<32x32xf32, #tpu.memory_space<vmem>>, vector<32x32xf32>
    %cst_27 = arith.constant dense<0.000000e+00> : vector<1x32xf32>
    %42 = tpu.matmul %40, %41, %cst_27 {dimension_numbers = #tpu.dot_dimension_numbers<[1], [0], [0], [1], [0, 0, 1, 1], [], []>} : vector<1x32xf32>, vector<32x32xf32>, vector<1x32xf32> -> vector<1x32xf32>
    %c0_28 = arith.constant 0 : index
    %c0_29 = arith.constant 0 : index
    %43 = vector.load %arg20[%c0_28, %c0_29] : memref<32x32xf32, #tpu.memory_space<vmem>>, vector<32x32xf32>
    %cst_30 = arith.constant dense<0.000000e+00> : vector<1x32xf32>
    %44 = tpu.matmul %38, %43, %cst_30 {dimension_numbers = #tpu.dot_dimension_numbers<[1], [0], [0], [1], [0, 0, 1, 1], [], []>} : vector<1x32xf32>, vector<32x32xf32>, vector<1x32xf32> -> vector<1x32xf32>
    %45 = arith.addf %42, %44 : vector<1x32xf32>
    %c0_31 = arith.constant 0 : index
    %c0_32 = arith.constant 0 : index
    %46 = vector.load %arg21[%c0_31, %c0_32] : memref<1x32xf32, #tpu.memory_space<vmem>>, vector<1x32xf32>
    %47 = arith.addf %45, %46 : vector<1x32xf32>
    %48 = math.tanh %47 : vector<1x32xf32>
    %c0_33 = arith.constant 0 : index
    %c0_34 = arith.constant 0 : index
    %49 = vector.load %arg22[%c0_33, %c0_34] : memref<32x3xf32, #tpu.memory_space<vmem>>, vector<32x3xf32>
    %cst_35 = arith.constant dense<0.000000e+00> : vector<1x3xf32>
    %50 = tpu.matmul %48, %49, %cst_35 {dimension_numbers = #tpu.dot_dimension_numbers<[1], [0], [0], [1], [0, 0, 1, 1], [], []>} : vector<1x32xf32>, vector<32x3xf32>, vector<1x3xf32> -> vector<1x3xf32>
    %c0_36 = arith.constant 0 : index
    %c0_37 = arith.constant 0 : index
    %51 = vector.load %arg23[%c0_36, %c0_37] : memref<1x3xf32, #tpu.memory_space<vmem>>, vector<1x3xf32>
    %52 = arith.addf %50, %51 : vector<1x3xf32>
    %c0_38 = arith.constant 0 : index
    %c0_39 = arith.constant 0 : index
    %c0_40 = arith.constant 0 : index
    %53 = vector.load %arg24[%c0_38, %c0_39, %c0_40] : memref<1x1x3xf32, #tpu.memory_space<vmem>>, vector<1x1x3xf32>
    %54 = vector.shape_cast %53 : vector<1x1x3xf32> to vector<1x3xf32>
    %55 = vector.shape_cast %52 : vector<1x3xf32> to vector<1x1x3xf32>
    tpu.vector_store %arg24[%c0_38, %c0_39, %c0_40], %55 {strides = array<i32>} : memref<1x1x3xf32, #tpu.memory_space<vmem>>, vector<1x1x3xf32>,
    return
  }
  func.func @transform_0(%arg0: i32, %arg1: memref<2xi32, #tpu.memory_space<smem>>) -> (i32, i32, i32) {
    %c0_i32 = arith.constant 0 : i32
    %c0_i32_0 = arith.constant 0 : i32
    %c0_i32_1 = arith.constant 0 : i32
    return %arg0, %c0_i32, %c0_i32_0 : i32, i32, i32
  }
  func.func @transform_1(%arg0: i32, %arg1: memref<2xi32, #tpu.memory_space<smem>>) -> (i32, i32, i32) {
    %c0_i32 = arith.constant 0 : i32
    %c0_i32_0 = arith.constant 0 : i32
    %c0_i32_1 = arith.constant 0 : i32
    return %arg0, %c0_i32, %c0_i32_0 : i32, i32, i32
  }
  func.func @transform_2(%arg0: i32, %arg1: memref<2xi32, #tpu.memory_space<smem>>) -> (i32, i32, i32) {
    %c0_i32 = arith.constant 0 : i32
    %c0_i32_0 = arith.constant 0 : i32
    %c0_i32_1 = arith.constant 0 : i32
    return %arg0, %c0_i32, %c0_i32_0 : i32, i32, i32
  }
  func.func @transform_3(%arg0: i32, %arg1: memref<2xi32, #tpu.memory_space<smem>>) -> (i32, i32, i32) {
    %c0_i32 = arith.constant 0 : i32
    %c0_i32_0 = arith.constant 0 : i32
    %c0_i32_1 = arith.constant 0 : i32
    return %arg0, %c0_i32, %c0_i32_0 : i32, i32, i32
  }
  func.func @transform_4(%arg0: i32, %arg1: memref<2xi32, #tpu.memory_space<smem>>) -> (i32, i32) {
    %c0_i32 = arith.constant 0 : i32
    %c0_i32_0 = arith.constant 0 : i32
    %c0_i32_1 = arith.constant 0 : i32
    return %c0_i32, %c0_i32_0 : i32, i32
  }
  func.func @transform_5(%arg0: i32, %arg1: memref<2xi32, #tpu.memory_space<smem>>) -> (i32, i32) {
    %c0_i32 = arith.constant 0 : i32
    %c0_i32_0 = arith.constant 0 : i32
    %c0_i32_1 = arith.constant 0 : i32
    return %c0_i32, %c0_i32_0 : i32, i32
  }
  func.func @transform_6(%arg0: i32, %arg1: memref<2xi32, #tpu.memory_space<smem>>) -> (i32, i32) {
    %c0_i32 = arith.constant 0 : i32
    %c0_i32_0 = arith.constant 0 : i32
    %c0_i32_1 = arith.constant 0 : i32
    return %c0_i32, %c0_i32_0 : i32, i32
  }
  func.func @transform_7(%arg0: i32, %arg1: memref<2xi32, #tpu.memory_space<smem>>) -> (i32, i32) {
    %c0_i32 = arith.constant 0 : i32
    %c0_i32_0 = arith.constant 0 : i32
    %c0_i32_1 = arith.constant 0 : i32
    return %c0_i32, %c0_i32_0 : i32, i32
  }
  func.func @transform_8(%arg0: i32, %arg1: memref<2xi32, #tpu.memory_space<smem>>) -> (i32, i32) {
    %c0_i32 = arith.constant 0 : i32
    %c0_i32_0 = arith.constant 0 : i32
    %c0_i32_1 = arith.constant 0 : i32
    return %c0_i32, %c0_i32_0 : i32, i32
  }
  func.func @transform_9(%arg0: i32, %arg1: memref<2xi32, #tpu.memory_space<smem>>) -> (i32, i32) {
    %c0_i32 = arith.constant 0 : i32
    %c0_i32_0 = arith.constant 0 : i32
    %c0_i32_1 = arith.constant 0 : i32
    return %c0_i32, %c0_i32_0 : i32, i32
  }
  func.func @transform_10(%arg0: i32, %arg1: memref<2xi32, #tpu.memory_space<smem>>) -> (i32, i32) {
    %c0_i32 = arith.constant 0 : i32
    %c0_i32_0 = arith.constant 0 : i32
    %c0_i32_1 = arith.constant 0 : i32
    return %c0_i32, %c0_i32_0 : i32, i32
  }
  func.func @transform_11(%arg0: i32, %arg1: memref<2xi32, #tpu.memory_space<smem>>) -> (i32, i32) {
    %c0_i32 = arith.constant 0 : i32
    %c0_i32_0 = arith.constant 0 : i32
    %c0_i32_1 = arith.constant 0 : i32
    return %c0_i32, %c0_i32_0 : i32, i32
  }
  func.func @transform_12(%arg0: i32, %arg1: memref<2xi32, #tpu.memory_space<smem>>) -> (i32, i32) {
    %c0_i32 = arith.constant 0 : i32
    %c0_i32_0 = arith.constant 0 : i32
    %c0_i32_1 = arith.constant 0 : i32
    return %c0_i32, %c0_i32_0 : i32, i32
  }
  func.func @transform_13(%arg0: i32, %arg1: memref<2xi32, #tpu.memory_space<smem>>) -> (i32, i32) {
    %c0_i32 = arith.constant 0 : i32
    %c0_i32_0 = arith.constant 0 : i32
    %c0_i32_1 = arith.constant 0 : i32
    return %c0_i32, %c0_i32_0 : i32, i32
  }
  func.func @transform_14(%arg0: i32, %arg1: memref<2xi32, #tpu.memory_space<smem>>) -> (i32, i32) {
    %c0_i32 = arith.constant 0 : i32
    %c0_i32_0 = arith.constant 0 : i32
    %c0_i32_1 = arith.constant 0 : i32
    return %c0_i32, %c0_i32_0 : i32, i32
  }
  func.func @transform_15(%arg0: i32, %arg1: memref<2xi32, #tpu.memory_space<smem>>) -> (i32, i32) {
    %c0_i32 = arith.constant 0 : i32
    %c0_i32_0 = arith.constant 0 : i32
    %c0_i32_1 = arith.constant 0 : i32
    return %c0_i32, %c0_i32_0 : i32, i32
  }
  func.func @transform_16(%arg0: i32, %arg1: memref<2xi32, #tpu.memory_space<smem>>) -> (i32, i32) {
    %c0_i32 = arith.constant 0 : i32
    %c0_i32_0 = arith.constant 0 : i32
    %c0_i32_1 = arith.constant 0 : i32
    return %c0_i32, %c0_i32_0 : i32, i32
  }
  func.func @transform_17(%arg0: i32, %arg1: memref<2xi32, #tpu.memory_space<smem>>) -> (i32, i32) {
    %c0_i32 = arith.constant 0 : i32
    %c0_i32_0 = arith.constant 0 : i32
    %c0_i32_1 = arith.constant 0 : i32
    return %c0_i32, %c0_i32_0 : i32, i32
  }
  func.func @transform_18(%arg0: i32, %arg1: memref<2xi32, #tpu.memory_space<smem>>) -> (i32, i32) {
    %c0_i32 = arith.constant 0 : i32
    %c0_i32_0 = arith.constant 0 : i32
    %c0_i32_1 = arith.constant 0 : i32
    return %c0_i32, %c0_i32_0 : i32, i32
  }
  func.func @transform_19(%arg0: i32, %arg1: memref<2xi32, #tpu.memory_space<smem>>) -> (i32, i32) {
    %c0_i32 = arith.constant 0 : i32
    %c0_i32_0 = arith.constant 0 : i32
    %c0_i32_1 = arith.constant 0 : i32
    return %c0_i32, %c0_i32_0 : i32, i32
  }
  func.func @transform_20(%arg0: i32, %arg1: memref<2xi32, #tpu.memory_space<smem>>) -> (i32, i32) {
    %c0_i32 = arith.constant 0 : i32
    %c0_i32_0 = arith.constant 0 : i32
    %c0_i32_1 = arith.constant 0 : i32
    return %c0_i32, %c0_i32_0 : i32, i32
  }
  func.func @transform_21(%arg0: i32, %arg1: memref<2xi32, #tpu.memory_space<smem>>) -> (i32, i32) {
    %c0_i32 = arith.constant 0 : i32
    %c0_i32_0 = arith.constant 0 : i32
    %c0_i32_1 = arith.constant 0 : i32
    return %c0_i32, %c0_i32_0 : i32, i32
  }
  func.func @transform_22(%arg0: i32, %arg1: memref<2xi32, #tpu.memory_space<smem>>) -> (i32, i32, i32) {
    %c0_i32 = arith.constant 0 : i32
    %c0_i32_0 = arith.constant 0 : i32
    %c0_i32_1 = arith.constant 0 : i32
    return %arg0, %c0_i32, %c0_i32_0 : i32, i32, i32
  }
}

</mosaic_0001>

<bundles_post_ra>
// kernel: tpu_custom_call.1
= control target key start
LH: loop header
LB: loop body
LE: loop exit
PB: predicated region body
PF: predicated region fallthrough
CT: control target
= control target key end

     0   :  { %s1779_s8 = smov [#allocation3]   ;;  %s2209_s0 = inlined_call_operand.vmem [shape: s32[2], index: 0, kind: input, shape index: {}]   ;;  %s2210_s1 = inlined_call_operand.hbm [shape: f32[2,8,32], index: 1, kind: input, shape index: {}]   ;;  %s2211_s2 = inlined_call_operand.hbm [shape: f32[2,8,8], index: 2, kind: input, shape index: {}]   ;;  %s2212_s3 = inlined_call_operand.hbm [shape: f32[2,8,50], index: 3, kind: input, shape index: {}]   ;;  %s2213_s4 = inlined_call_operand.vmem [shape: f32[2,1,16], index: 4, kind: input, shape index: {}]   ;;  %s2214_s5 = inlined_call_operand.hbm [shape: f32[16,16], index: 5, kind: input, shape index: {}]   ;;  %s2215_s6 = inlined_call_operand.vmem [shape: f32[1,16], index: 6, kind: input, shape index: {}]   ;;  %s2216_s7 = inlined_call_operand.hbm [shape: f32[50,50], index: 7, kind: input, shape index: {}]   ;;  %s2217_s8 = inlined_call_operand.vmem [shape: f32[1,50], index: 8, kind: input, shape index: {}]   ;;  %s2218_s9 = inlined_call_operand.hbm [shape: f32[50,50], index: 9, kind: input, shape index: {}]   ;;  %s2219_s10 = inlined_call_operand.vmem [shape: f32[1,50], index: 10, kind: input, shape index: {}]   ;;  %s2220_s11 = inlined_call_operand.hbm [shape: f32[50,50], index: 11, kind: input, shape index: {}]   ;;  %s2221_s12 = inlined_call_operand.vmem [shape: f32[1,50], index: 12, kind: input, shape index: {}]   ;;  %s2222_s13 = inlined_call_operand.vmem [shape: f32[1,32], index: 13, kind: input, shape index: {}]   ;;  %s2223_s14 = inlined_call_operand.vmem [shape: f32[1,50], index: 14, kind: input, shape index: {}]   ;;  %s2224_s15 = inlined_call_operand.vmem [shape: f32[1,32], index: 15, kind: input, shape index: {}]   ;;  %s2225_s16 = inlined_call_operand.vmem [shape: f32[1,8], index: 16, kind: input, shape index: {}]   ;;  %s2226_s17 = inlined_call_operand.vmem [shape: f32[1,16], index: 17, kind: input, shape index: {}]   ;;  %s2227_s18 = inlined_call_operand.vmem [shape: f32[32,32], index: 18, kind: input, shape index: {}]   ;;  %s2228_s19 = inlined_call_operand.hbm [shape: f32[32,32], index: 19, kind: input, shape index: {}]   ;;  %s2229_s20 = inlined_call_operand.vmem [shape: f32[1,32], index: 20, kind: input, shape index: {}]   ;;  %s2230_s21 = inlined_call_operand.vmem [shape: f32[32,3], index: 21, kind: input, shape index: {}]   ;;  %s2231_s22 = inlined_call_operand.vmem [shape: f32[1,3], index: 22, kind: input, shape index: {}]   ;;  %s2232_s23 = inlined_call_operand.hbm [shape: f32[2,1,3], index: 23, kind: output, shape index: {}]  }
   0x1   :  { %2251 = sst [smem:[#allocation32_spill]] %s2209_s0 }
   0x2   :  { %2252 = sst [smem:[#allocation33_spill]] %s2210_s1 }
   0x3   :  { %2253 = sst [smem:[#allocation34_spill]] %s2211_s2 }
   0x4   :  { %2254 = sst [smem:[#allocation35_spill]] %s2212_s3 }
   0x5   :  { %2255 = sst [smem:[#allocation36_spill]] %s2213_s4 }
   0x6   :  { %2256 = sst [smem:[#allocation37_spill]] %s2214_s5 }
   0x7   :  { %2257 = sst [smem:[#allocation38_spill]] %s2215_s6 }
   0x8   :  { %2258 = sst [smem:[#allocation39_spill]] %s2216_s7 }
   0x9   :  { %2259 = sst [smem:[#allocation40_spill]] %s2218_s9 }
   0xa   :  { %2260 = sst [smem:[#allocation41_spill]] %s2220_s11 }
   0xb   :  { %2261 = sst [smem:[#allocation42_spill]] %s2229_s20 }
   0xc   :  { %2262 = sst [smem:[#allocation43_spill]] %s2231_s22 }
   0xd   :  { %2263 = sst [smem:[#allocation44_spill]] %s2232_s23 }
   0xe   :  { %s2264_s29 = sld [smem:[#allocation32_spill]] }
  0x14   :  { %s29_s3 = sshll.u32 %s2264_s29, 4  ;;  %s30_s3 = int_to_ptr.vmem [resolvable:$true] %s29_s3 }
  0x15   :  { %32 = dma.vmem_to_smem %s30_s3, 16, %s1779_s8, [#allocation2] }
  0x16   :  { %1737 = dma.done.wait [#allocation2], 16 }
  0x17   :  { %1738 = vsyncadd [#allocation2], 4294967280 }
  0x18   :  { %35 = sfence }
  0x19   :  { %36 = vsyncpa [#allocation5], 0 }
  0x1a   :  { %38 = vsyncpa [#allocation5 + $0x1], 0 }
  0x1b   :  { %39 = vsyncpa [#allocation8], 0 }
  0x1c   :  { %41 = vsyncpa [#allocation8 + $0x1], 0 }
  0x1d   :  { %42 = vsyncpa [#allocation11], 0 }
  0x1e   :  { %43 = vsyncpa [#allocation14], 0 }
  0x1f   :  { %44 = vsyncpa [#allocation17], 0 }
  0x20   :  { %45 = vsyncpa [#allocation6], 0 }
  0x21   :  { %47 = vsyncpa [#allocation6 + $0x1], 0  ;;  %s1911_s4 = smov 0   ;;  %s1913_s0 = smov 0  }
  0x22   :  { %s1915_s10 = smov 0   ;;  %s1917_s30 = smov 0  }
  0x23 LB: > { %2265 = sst [smem:[#allocation26_spill]] %s1765_s4  ;;  %s1935_s6 = sadd.s32 4294967295, %s1777_s30   ;;  %s1777_s30 = sphi %s1917_s30, %s2303_s30   ;;  %s1773_s10 = sphi %s1915_s10, %s2307_s10   ;;  %s1769_s0 = sphi %s1913_s0, %s2306_s0   ;;  %s1765_s4 = sphi %s1911_s4, %s2305_s4  }
  0x24   : > { %2266 = sst [smem:[#allocation27_spill]] %s1777_s30  ;;  %p1291_p0 = scmp.ge.s32.totalorder %s1777_s30, 1 }
  0x25   : > { %s2267_s12 = sld [smem:[#allocation37_spill]]  ;;  %p2248_p1 = scmp.eq.s32.totalorder %s1935_s6, 0 }
  0x26   : > { %p566_p2 = scmp.lt.s32.totalorder %s1777_s30, 3  ;;  %s1780_s7 = smov [#allocation10]  }
  0x27   : > { %s579_s14 = sshll.u32 %s1780_s7, 4  ;;  %s2269_s9 = sld [smem:[#allocation40_spill]]  ;;  %s580_s14 = int_to_ptr.vmem [resolvable:$true] %s579_s14 }
  0x28   : > { %p1940_p3 = pnand %p1291_p0, %p566_p2  ;;  %s1781_s28 = smov [#allocation13]  }
  0x29   : > { %s613_s29 = sshll.u32 %s1781_s28, 4  ;;  %s2236_s3 = smov 128   ;;  %s614_s29 = int_to_ptr.vmem [resolvable:$true] %s613_s29 }
  0x2a   : > { %p1352_p4 = pneg %p1940_p3  ;;  %s2238_s8 = smov 8  }
  0x2b   : > { %s577_s25 = sshll.u32 %s2267_s12, 4  ;;  %s1290_s5 = sadd.s32 4294967294, %s1777_s30   ;;  %s578_s25 = int_to_ptr.hbm [resolvable:$true] %s577_s25 }
  0x2c   : > { %p1952_p6 = pnand %p1352_p4, %p2248_p1  ;;  %s1968_s24 = sadd.s32 1, %s1777_s30  }
  0x2d   : > { %s611_s2 = sshll.u32 %s2269_s9, 4  ;;  %2271 = sst [smem:[#allocation28_spill]] %s1968_s24  ;;  %s612_s2 = int_to_ptr.hbm [resolvable:$true] %s611_s2 }
  0x2e   : > { %1355 = dma.hbm_to_vmem [thread:$0]  (!%p1952_p6), %s578_s25, 256, %s580_s14, [#allocation11], %s2236_s3, %s2236_s3, %s2238_s8  }
  0x2f   : > { %1361 = dma.hbm_to_vmem [thread:$0]  (!%p1952_p6), %s612_s2, 896, %s614_s29, [#allocation14], %s2236_s3, %s2236_s3, %s2238_s8  }
  0x30   : > { %s57_s12 = ssub.s32 %s1777_s30, %s1968_s24  ;;  %s60_s7 = sadd.s32 1, %s1773_s10 }
  0x31   : > { %p58_p7 = scmp.eq.s32.totalorder %s57_s12, 0  ;;  %p67_p8 = scmp.ne.s32.totalorder %s1773_s10, %s1769_s0 }
  0x32   : > { %p68_p9 = scmp.eq.s32.totalorder %s1777_s30, 0  ;;  %p73_p10 = scmp.ne.s32.totalorder %s1769_s0, %s1765_s4 }
  0x33   : > { %s1979_s25 = scalar_select %p58_p7, %s1773_s10, %s60_s7  }
  0x34   : > { %p69_p11 = por %p68_p9, %p67_p8  ;;  %p1983_p12 = por %p2248_p1, %p73_p10 }
  0x35   : > { %2272 = sst [smem:[#allocation29_spill]] %s1979_s25  ;;  %p553_p13 = scmp.eq.s32.totalorder %s1935_s6, 1 }
  0x36   : > { %p559_p0 = scmp.eq.s32.totalorder %s1290_s5, 1  ;;  %p1387_p2 = scmp.lt.s32.totalorder %s1777_s30, 2 }
  0x37   : > { %s2243_s1 = sand.u32 1, %s1773_s10   ;;  %p1990_p4 = por %p553_p13, %p67_p8 }
  0x38   : > { %p1994_p5 = por %p559_p0, %p73_p10  ;;  %s2000_s28 = sshll.u32 %s2243_s1, 3 }
  0x39   : > { %s2274_s26 = scalar_select %p1990_p4, 1, 0 }
  0x3a   : > { %s2276_s2 = scalar_select %p1994_p5, 1, 0 }
  0x3b   : > { %2275 = sst [smem:[#allocation30_spill]] %s2274_s26  ;;  %s2003_s29 = sshll.u32 %s1777_s30, 3 }
  0x3c   : > { %2277 = sst [smem:[#allocation31_spill]] %s2276_s2  ;;  %p2005_p7 = pnand %p1387_p2, %p69_p11 }
  0x3d   : > { %s707_s5 = sand.u32 1, %s1777_s30   ;;  %s2279_s8 = sld [smem:[#allocation34_spill]] }
  0x3e   : > { %s711_s24 = scalar_lea.vmem [#allocation7], %s2000_s28  ;;  %s2015_s1 = scalar_lea.sflag [#allocation8], %s707_s5 }
  0x3f   : > { %s719_s2 = sshll.u32 %s711_s24, 4  ;;  %p1517_p9 = pneg %p2005_p7  ;;  %s720_s2 = int_to_ptr.vmem [resolvable:$true] %s719_s2 }
  0x43   : > { %s715_s9 = scalar_lea.hbm %s2279_s8, %s2003_s29 }
  0x44   : > { %s717_s25 = sshll.u32 %s715_s9, 4  ;;  %s1520_s9 = scalar_lea.hbm %s2279_s8, 16  ;;  %s718_s25 = int_to_ptr.hbm [resolvable:$true] %s717_s25 }
  0x45   : > { %s1513_s4 = sshra.s32 %s718_s25, 4  ;;  %s1514_s4 = int_to_ptr.hbm [resolvable:$true] %s1513_s4 }
  0x46   : > { %s1515_s26 = scalar_lea.hbm %s1514_s4, 8  ;;  %p1521_p13 = scmp.lt.s32.totalorder %s1514_s4, %s2279_s8 }
  0x47   : > { %p1516_p8 = scmp.ne.s32.totalorder %s1514_s4, %s1515_s26  ;;  %p1522_p0 = scmp.lt.s32.totalorder %s1520_s9, %s1515_s26 }
  0x49   : > { %p1518_p10 = pnand %p1517_p9, %p1516_p8  ;;  %p1523_p2 = por %p1522_p0, %p1521_p13 }
  0x4b   : > { %p1519_p11 = pneg %p1518_p10 }
  0x4d   : > { %p1524_p1 = pnand %p1523_p2, %p1519_p11 }
  0x4f   : > { %1527 = shalt.err (!%p1524_p1)
}
  0x50   : > { %1374 = dma.hbm_to_vmem [thread:$0]  (!%p2005_p7), %s718_s25, 128, %s720_s2, %s2015_s1  }
  0x51   : > { %s2280_s23 = sld [smem:[#allocation39_spill]]  ;;  %s1784_s30 = smov [#allocation12]  }
  0x52   : > { %s596_s3 = sshll.u32 %s1784_s30, 4  ;;  %s2281_s11 = sld [smem:[#allocation41_spill]]  ;;  %s597_s3 = int_to_ptr.vmem [resolvable:$true] %s596_s3 }
  0x53   : > { %s2282_s7 = smov 8   ;;  %s2283_s24 = smov 128  }
  0x54   : > { %s1785_s25 = smov [#allocation15]   ;;  %s663_s5 = sshll.u32 %s2228_s19, 4  ;;  %s664_s5 = int_to_ptr.hbm [resolvable:$true] %s663_s5 }
  0x55   : > { %s630_s22 = sshll.u32 %s1785_s25, 4  ;;  %s1786_s30 = smov [#allocation16]   ;;  %s631_s22 = int_to_ptr.vmem [resolvable:$true] %s630_s22 }
  0x56   : > { %s665_s4 = sshll.u32 %s1786_s30, 4  ;;  %s2284_s26 = sld [smem:[#allocation33_spill]]  ;;  %s666_s4 = int_to_ptr.vmem [resolvable:$true] %s665_s4 }
  0x57   : > { %s594_s20 = sshll.u32 %s2280_s23, 4  ;;  %s692_s23 = scalar_lea.vmem [#allocation4], %s2000_s28  ;;  %s595_s20 = int_to_ptr.hbm [resolvable:$true] %s594_s20 }
  0x58   : > { %s628_s9 = sshll.u32 %s2281_s11, 4  ;;  %s700_s2 = sshll.u32 %s692_s23, 4  ;;  %s629_s9 = int_to_ptr.hbm [resolvable:$true] %s628_s9  ;;  %s701_s2 = int_to_ptr.vmem [resolvable:$true] %s700_s2 }
  0x59   : > { %1358 = dma.hbm_to_vmem [thread:$0]  (!%p1952_p6), %s595_s20, 896, %s597_s3, [#allocation11], %s2283_s24, %s2283_s24, %s2282_s7  }
  0x5a   : > { %1364 = dma.hbm_to_vmem [thread:$0]  (!%p1952_p6), %s629_s9, 896, %s631_s22, [#allocation14], %s2283_s24, %s2283_s24, %s2282_s7  }
  0x5b   : > { %1367 = dma.hbm_to_vmem [thread:$0]  (!%p1952_p6), %s664_s5, 512, %s666_s4, [#allocation17], %s2283_s24, %s2283_s24, %s2282_s7  }
  0x5c   : > { %s696_s8 = scalar_lea.hbm %s2284_s26, %s2003_s29  ;;  %s2285_s11 = sand.u32 1, %s1773_s10  }
  0x5d   : > { %s698_s25 = sshll.u32 %s696_s8, 4  ;;  %s689_s9 = scalar_lea.sflag [#allocation5], %s2285_s11  ;;  %s699_s25 = int_to_ptr.hbm [resolvable:$true] %s698_s25 }
  0x5e   : > { %s1633_s22 = sshra.s32 %s699_s25, 4  ;;  %s1640_s3 = scalar_lea.hbm %s2284_s26, 16  ;;  %s1634_s22 = int_to_ptr.hbm [resolvable:$true] %s1633_s22 }
  0x5f   : > { %s1635_s30 = scalar_lea.hbm %s1634_s22, 8  ;;  %p1641_p6 = scmp.lt.s32.totalorder %s1634_s22, %s2284_s26 }
  0x60   : > { %p1636_p1 = scmp.ne.s32.totalorder %s1634_s22, %s1635_s30  ;;  %p1642_p11 = scmp.lt.s32.totalorder %s1640_s3, %s1635_s30 }
  0x62   : > { %p1638_p8 = pnand %p1636_p1, %p1517_p9  ;;  %p1643_p13 = por %p1642_p11, %p1641_p6 }
  0x64   : > { %p1639_p10 = pneg %p1638_p8 }
  0x66   : > { %p1644_p0 = pnand %p1643_p13, %p1639_p10 }
  0x68   : > { %1647 = shalt.err (!%p1644_p0)
}
  0x69   : > { %1371 = dma.hbm_to_vmem [thread:$0]  (!%p2005_p7), %s699_s25, 128, %s701_s2, %s689_s9  }
  0x6a   : > { %s2286_s5 = sld [smem:[#allocation35_spill]]  ;;  %s730_s27 = scalar_lea.vmem [#allocation9], %s2000_s28 }
  0x6b   : > { %s738_s20 = sshll.u32 %s730_s27, 4  ;;  %s739_s20 = int_to_ptr.vmem [resolvable:$true] %s738_s20 }
  0x70   : > { %s734_s4 = scalar_lea.hbm %s2286_s5, %s2003_s29  ;;  %s1670_s25 = scalar_lea.hbm %s2286_s5, 16 }
  0x71   : > { %s736_s23 = sshll.u32 %s734_s4, 4  ;;  %s737_s23 = int_to_ptr.hbm [resolvable:$true] %s736_s23 }
  0x72   : > { %s1663_s22 = sshra.s32 %s737_s23, 4  ;;  %s1664_s22 = int_to_ptr.hbm [resolvable:$true] %s1663_s22 }
  0x73   : > { %s1665_s30 = scalar_lea.hbm %s1664_s22, 8  ;;  %p1671_p10 = scmp.lt.s32.totalorder %s1664_s22, %s2286_s5 }
  0x74   : > { %p1666_p2 = scmp.ne.s32.totalorder %s1664_s22, %s1665_s30  ;;  %p1672_p6 = scmp.lt.s32.totalorder %s1670_s25, %s1665_s30 }
  0x76   : > { %p1668_p1 = pnand %p1666_p2, %p1517_p9  ;;  %p1673_p11 = por %p1672_p6, %p1671_p10 }
  0x78   : > { %p1669_p8 = pneg %p1668_p1 }
  0x7a   : > { %p1674_p13 = pnand %p1673_p11, %p1669_p8 }
  0x7c   : > { %1677 = shalt.err (!%p1674_p13)
}
  0x7d   : > { %1377 = dma.hbm_to_vmem [thread:$0]  (!%p2005_p7), %s737_s23, 128, %s739_s20, %s2015_s1  }
  0x7e   : > { %753 = sbr.rel (%p1940_p3) target bundleno = 1063 (0x427), region = 108  ;;  %s2093_s28 = sand.u32 (!%p1940_p3), 1, %s1769_s0  }
  0x7f   : > { %s1305_s29 = sshll.u32 (!%p1940_p3), %s2093_s28, 3  ;;  %s756_s8 = scalar_lea.sflag (!%p1940_p3), [#allocation5], %s2093_s28 }
  0x80   : > { %s759_s11 = scalar_lea.vmem (!%p1940_p3), [#allocation4], %s1305_s29 }
  0x83   : > { %1740 = dma.done.wait (%p1983_p12), %s756_s8, 128  }
  0x84   : > { %1742 = vsyncadd (%p1983_p12), %s756_s8, 4294967168  ;;  %s765_s1 = sand.u32 1, %s1935_s6   ;;  %s769_s13 = scalar_lea.vmem [#allocation7], %s1305_s29 }
  0x85   : > { %s766_s12 = scalar_lea.sflag [#allocation8], %s765_s1 }
  0x86   : > { %1744 = dma.done.wait (%p1983_p12), %s766_s12, 256  }
  0x87   : > { %1746 = vsyncadd (%p1983_p12), %s766_s12, 4294967040  ;;  %p2287_p3 = scmp.eq.s32.totalorder %s1935_s6, 0 }
  0x89   : > { %1748 = dma.done.wait (%p2287_p3), [#allocation11], 1152   ;;  %p2288_p7 = pmov %p2287_p3 }
  0x8a   : > { %p2289_p9 = pmov %p2287_p3 }
  0x8b   : > { %1750 = vsyncadd (%p2288_p7), [#allocation11], 4294966144 }
  0x8c   : > { %1752 = dma.done.wait (%p2289_p9), [#allocation14], 1792   ;;  %p2290_p0 = pmov %p2287_p3 }
  0x8e   : > { %1754 = vsyncadd (%p2290_p0), [#allocation14], 4294965504  ;;  %p2291_p2 = pmov %p2290_p0 }
  0x8f   : > { %p2292_p1 = pmov %p2290_p0 }
  0x90   : > { %1756 = dma.done.wait (%p2291_p2), [#allocation17], 512  }
  0x91   : > { %1758 = vsyncadd (%p2292_p1), [#allocation17], 4294966784  ;;  %p878_p12 = scmp.lt.s32.totalorder %s1935_s6, 1  ;;  %v882_v0 = vlaneseq  ;;  %s884_s14 = sld [smem:[#allocation3 + %s1935_s6]]  ;;  %vm954_vm0 = vcmask 261120   ;;  %v893_v2 = vld [vmem:[#allocation10 + $0x8] sm:$0xff] }
  0x92   : > { %s2293_s27 = sld [smem:[#allocation36_spill]]  ;;  %v892_v3 = vld [vmem:[#allocation10] sm:$0xff]  ;;  %913 = vmatpush.msra.mxu0 %v893_v2  ;;  %vm895_vm1 = vcmask 130048   ;;  %v881_v6 = vld [vmem:[%s759_s11] sm:$0xff]  ;;  %v1787_v9 = vmov 0.0   ;;  %vm927_vm3 = vcmask 64512  }
  0x93   : > { %s879_s24 = scalar_select %p878_p12, %s1935_s6, 1  ;;  %v883_v1 = vshrl.u32 %v882_v0, 7  ;;  %v889_v7 = vld [vmem:[%s769_s13] sm:$0xff]  ;;  %1316 = vmatpush.xpose.msk.msra.mxu2 %vm954_vm0, %v881_v6  ;;  %v925_v8 = vld [vmem:[%s2224_s15] sm:$0x1]  ;;  %1012 = vmatpush.msra.mxu3 %v881_v6  ;;  %vm921_vm4 = vcmask 122880  }
  0x94   : > { %914 = vmatpush.msra.mxu0 %v892_v3  ;;  %v926_v12 = vld [vmem:[%s2225_s16] sm:$0x1]  ;;  %s2294_s9 = sld [smem:[#allocation38_spill]]  ;;  %vm982_vm5 = vcmask 57344   ;;  %v1030_v31 = vld [vmem:[#allocation16 + $0x10] sm:$0xff]  ;;  %v1029_v33 = vld [vmem:[#allocation16 + $0x8] sm:$0xff] }
  0x95   : > { %v919_v15 = vld [vmem:[%s2226_s17] sm:$0x1]  ;;  %v1027_v32 = vld [vmem:[%s2227_s18 + $0x18] sm:$0xff]  ;;  %v1028_v34 = vld [vmem:[#allocation16] sm:$0xff]  ;;  %v1017_v38 = vsel %vm954_vm0, %v881_v6, -inf  ;;  %s2295_s8 = sld [smem:[#allocation42_spill]] }
  0x96   : > { %1317 = vmatmul.msk.f32.vlgmr.msra.gmra.mxu2 %vm954_vm0, %v925_v8  ;;  %v1031_v30 = vld [vmem:[#allocation16 + $0x18] sm:$0xff]  ;;  %1070 = vmatpush.msrb.mxu0 %v1027_v32  ;;  %v1018_v39 = vrot.slane %v1017_v38, 4  ;;  %v1026_v44 = vld [vmem:[%s2227_s18 + $0x10] sm:$0xff]  ;;  %v1025_v45 = vld [vmem:[%s2227_s18 + $0x8] sm:$0xff]  ;;  %s2296_s12 = sld [smem:[#allocation44_spill]]  ;;  %vm1109_vm6 = vcmask 16384  }
  0x97   : > { %v885_v4 = vstv %s884_s14  ;;  %1047 = vmatpush.msrb.mxu3 %v1031_v30  ;;  %v1024_v46 = vld [vmem:[%s2227_s18] sm:$0xff]  ;;  %v1084_v49 = vld [vmem:[%s2230_s21 + $0x18] sm:$0xff]  ;;  %v1083_v50 = vld [vmem:[%s2230_s21 + $0x10] sm:$0xff]  ;;  %s2297_s4 = sld [smem:[#allocation43_spill]]  ;;  %s1112_s30 = scalar_lea.sflag [#allocation6], %s2093_s28 }
  0x98   : > { %s880_s20 = scalar_lea.vmem %s2293_s27, %s879_s24  ;;  %vm886_vm2 = vcmp.lt.s32.totalorder %v883_v1, %v885_v4  ;;  %v1019_v40 = vmax.f32 %v1017_v38, %v1018_v39  ;;  %1071 = vmatpush.msrb.mxu0 %v1026_v44  ;;  %v1082_v51 = vld [vmem:[%s2230_s21 + $0x8] sm:$0xff]  ;;  %v1081_v52 = vld [vmem:[%s2230_s21] sm:$0xff]  ;;  %s877_s27 = scalar_lea.vmem [#allocation18], %s2093_s28 }
  0x99   : > { %v891_v5 = vld [vmem:[%s880_s20] sm:$0x1]  ;;  %v1312_v10 = vsel %vm886_vm2, 1.0, %v1787_v9  ;;  %1048 = vmatpush.msrb.mxu3 %v1030_v31  ;;  %s1122_s20 = sshll.u32 %s877_s27, 4  ;;  %s1123_s20 = int_to_ptr.vmem [resolvable:$true] %s1122_s20 }
  0x9a   : > { %v890_v11 = vmul.f32 %v1312_v10, %v889_v7  ;;  %1313 = vmatmul.msk.f32.vlgmr.msra.gmra.mxu0 %vm895_vm1, %v891_v5  ;;  %v894_v13 = vld [vmem:[%s2294_s9] sm:$0x1]  ;;  %v1020_v41 = vrot.slane %v1019_v40, 2 }
  0x9b   : > { %1049 = vmatpush.msrb.mxu3 %v1029_v33  ;;  %1072 = vmatpush.msrb.mxu0 %v1025_v45  ;;  %v1078_v55 = vld [vmem:[%s2295_s8] sm:$0x1] }
  0x9c   : > { %1314 = vmatpush.xpose.msk.msra.mxu1 %vm927_vm3, %v890_v11  ;;  %v1021_v42 = vmax.f32 %v1019_v40, %v1020_v41  ;;  %s1120_s13 = scalar_lea.hbm %s2296_s12, %s1935_s6  ;;  %s1713_s2 = scalar_lea.hbm %s2296_s12, 2 }
  0x9d   : > { %1050 = vmatpush.msrb.mxu3 %v1028_v34  ;;  %1073 = vmatpush.msrb.mxu0 %v1024_v46  ;;  %v1085_v59 = vld [vmem:[%s2297_s4] sm:$0x1]  ;;  %s1124_s22 = sshll.u32 %s1120_s13, 4  ;;  %s1125_s22 = int_to_ptr.hbm [resolvable:$true] %s1124_s22 }
  0x9e   : > { %v1022_v43 = vrot.slane %v1021_v42, 1  ;;  %s1707_s3 = sshra.s32 %s1125_s22, 4  ;;  %s1708_s3 = int_to_ptr.hbm [resolvable:$true] %s1707_s3 }
  0x9f   : > { %1315 = vmatmul.msk.f32.vlgmr.msra.gmra.mxu1 %vm927_vm3, %v926_v12  ;;  %s1709_s7 = scalar_lea.hbm %s1708_s3, 1  ;;  %p1714_p11 = scmp.lt.s32.totalorder %s1708_s3, %s2296_s12 }
  0xa0   : > { %v1023_v47 = vmax.f32 %v1021_v42, %v1022_v43  ;;  %1101 = vmatpush.msrb.mxu1 %v1084_v49  ;;  %p1710_p8 = scmp.ne.s32.totalorder %s1708_s3, %s1709_s7  ;;  %p1715_p13 = scmp.lt.s32.totalorder %s1713_s2, %s1709_s7 }
  0xa2   : > { %1320 = vmatmul.msk.f32.vlgmr.msrb.gmra.mxu0 %vm954_vm0, %v1023_v47  ;;  %1102 = vmatpush.msrb.mxu1 %v1083_v50  ;;  %p1711_p10 = pnand %p1710_p8, %p1990_p4  ;;  %p1716_p3 = por %p1715_p13, %p1714_p11 }
  0xa4   : > { %1103 = vmatpush.msrb.mxu1 %v1082_v51  ;;  %p1712_p6 = pneg %p1711_p10 }
  0xa6   : > { %1104 = vmatpush.msrb.mxu1 %v1081_v52  ;;  %p1717_p7 = pnand %p1716_p3, %p1712_p6 }
 0x117   : > { %v916_v14 = vpop.f32.mrf.mxu0 }
 0x118   : > { %v917_v16 = vadd.f32 %v916_v14, %v894_v13 }
 0x119   : > { %v978_v20 = vpop.f32.mrf.mxu2 }
 0x11a   : > { %v920_v17 = vmul.f32 %v919_v15, %v917_v16 }
 0x11c   : > { %v922_v18 = vsel %vm921_vm4, %v920_v17, 0.0  ;;  %v951_v19 = vpop.f32.mrf.mxu1 }
 0x11d   : > { %923 = vadd.xlane.f32.xlu0 %v922_v18  ;;  %v979_v21 = vadd.f32 %v978_v20, %v951_v19 }
 0x11f   : > { %v1075_v53 = vpop.f32.mrf.mxu0 }
 0x190   : > { %v924_v22 = vpop.xlane.xlu0 %923 }
 0x191   : > { %v981_v23 = vadd.f32 %v979_v21, %v924_v22 }
 0x193   : > { %v983_v24 = vsel %vm982_vm5, %v981_v23, -inf }
 0x194   : > { %984 = vmax.xlane.f32.xlu0 %v983_v24 }
 0x207   : > { %v985_v25 = vpop.xlane.xlu0 %984 }
 0x208   : > { %v986_v26 = vsub.f32 %v981_v23, %v985_v25 }
 0x20a   : > { %v987_v27 = vmul.f32 1.442695, %v986_v26 }
 0x20c   : > { %1435 = vpow2.f32 %v987_v27 }
 0x212   : > { %v1436_v28 = vpop.eup %1435 }
 0x213   : > { %v989_v29 = vsel %vm982_vm5, %v1436_v28, 0.0 }
 0x214   : > { %990 = vadd.xlane.f32.xlu1 %v989_v29 }
 0x287   : > { %v991_v35 = vpop.xlane.xlu1 %990 }
 0x288   : > { %1437 = vrcp.f32 %v991_v35 }
 0x28e   : > { %v1438_v36 = vpop.eup %1437 }
 0x28f   : > { %v993_v37 = vmul.f32 %v1438_v36, %v1436_v28 }
 0x291   : > { %1318 = vmatmul.msk.f32.vlgmr.msra.gmra.mxu3 %vm927_vm3, %v993_v37 }
 0x314   : > { %v1014_v48 = vpop.f32.mrf.mxu3 }
 0x315   : > { %1319 = vmatmul.msk.f32.vlgmr.msrb.gmra.mxu3 %vm954_vm0, %v1014_v48 }
 0x398   : > { %v1052_v54 = vpop.f32.mrf.mxu3 }
 0x399   : > { %v1076_v56 = vadd.f32 %v1075_v53, %v1052_v54 }
 0x39b   : > { %v1079_v57 = vadd.f32 %v1078_v55, %v1076_v56 }
 0x39d   : > { %1439 = vtanh.f32 %v1079_v57 }
 0x3a3   : > { %v1440_v58 = vpop.eup %1439 }
 0x3a4   : > { %1321 = vmatmul.msk.f32.vlgmr.msrb.gmra.mxu1 %vm954_vm0, %v1440_v58 }
 0x421   : > { %v1106_v60 = vpop.f32.mrf.mxu1 }
 0x422   : > { %v1107_v61 = vadd.f32 %v1106_v60, %v1085_v59 }
 0x424   : > { %1110 = vst.msk [vmem:[%s877_s27] sm:$0x1] %vm1109_vm6, %v1107_v61 }
 0x425   : > { %1720 = shalt.err (!%p1717_p7)
}
 0x426   : > { %1350 = dma.vmem_to_hbm [thread:$0]  (%p1990_p4), %s1123_s20, 16, %s1125_s22, %s1112_s30  }
 0x427 PF: > { %s2299_s28 = sld [smem:[#allocation26_spill]] }
 0x428   : > { %s2301_s11 = sld [smem:[#allocation27_spill]] }
 0x42d   : > { %s1136_s1 = sand.u32 1, %s2299_s28  }
 0x42e   : > { %p2302_p9 = scmp.ge.s32.totalorder %s2301_s11, 2  ;;  %s1137_s13 = scalar_lea.sflag [#allocation6], %s1136_s1 }
 0x430   : > { %p1379_p0 = pnand %p2302_p9, %p1994_p5 }
 0x432   : > { %p1380_p2 = pneg %p1379_p0 }
 0x434   : > { %1760 = dma.done.wait (%p1380_p2), %s1137_s13, 16  }
 0x435   : > { %1762 = vsyncadd (%p1380_p2), %s1137_s13, 4294967280  ;;  %s2303_s30 = sld [smem:[#allocation28_spill]]  ;;  %s2305_s4 = smov %s1769_s0 }
 0x436   : > { %s2304_s14 = sld [smem:[#allocation29_spill]]  ;;  %s2306_s0 = smov %s1773_s10 }
 0x43b   : > { %p50_p1 = scmp.ge.s32.totalorder %s2303_s30, 4  }
 0x43c   : > { %s2307_s10 = smov %s2304_s14 }
 0x43d   :  { %52 = sbr.rel (!%p50_p1) target bundleno = 35 (0x23), region = 200 }
 0x442   :  { %1142 = vsyncpa [#allocation5], 1 }
 0x443   :  { %1144 = vsyncpa [#allocation5 + $0x1], 1 }
 0x444   :  { %1145 = vsyncpa [#allocation8], 1 }
 0x445   :  { %1147 = vsyncpa [#allocation8 + $0x1], 1 }
 0x446   :  { %1148 = vsyncpa [#allocation11], 1 }
 0x447   :  { %1149 = vsyncpa [#allocation14], 1 }
 0x448   :  { %1150 = vsyncpa [#allocation17], 1 }
 0x449   :  { %1151 = vsyncpa [#allocation6], 1 }
 0x44a   :  { %1153 = vsyncpa [#allocation6 + $0x1], 1 }

</bundles_post_ra>
